<compile_context>
chip_gen: v5e
topology: v5e:2x2
jax: 0.10.0
libtpu: 0.0.40
codegen_flags: <defaults>
</compile_context>

<pallas_src>
import jax
import jax.numpy as jnp
from jax.experimental import pallas as pl
from jax.experimental.pallas import tpu as pltpu


def _round_up(x, m):
    return ((x + m - 1) // m) * m


def _cdiv(a, b):
    return -(-a // b)


def actor_kernel(x_ref, w1_ref, b1_ref, w2_ref, b2_ref, w3_ref, b3_ref, o_ref):
    # Cast the x tile to bf16 in-kernel (VPU work, overlapped with MXU).
    x = x_ref[...].astype(jnp.bfloat16)

    # fc1 + ReLU  (bf16 operands, f32 accumulation, f32 elementwise)
    h1 = jnp.dot(x, w1_ref[...], preferred_element_type=jnp.float32)
    h1 = jnp.maximum(h1 + b1_ref[...], 0.0)

    # fc2 + ReLU
    h2 = jnp.dot(h1.astype(jnp.bfloat16), w2_ref[...],
                 preferred_element_type=jnp.float32)
    h2 = jnp.maximum(h2 + b2_ref[...], 0.0)

    # out + tanh
    y = jnp.dot(h2.astype(jnp.bfloat16), w3_ref[...],
                preferred_element_type=jnp.float32)
    o_ref[...] = jnp.tanh(y + b3_ref[...]).astype(o_ref.dtype)


def prepare_actor_params(params):
    """One-time preprocessing: bf16 weights in (in, out) layout, f32 (1, N) biases.

    Keeps all per-call HBM passes (casts / reshapes) off the hot path.
    """
    return {
        "w1": params["w1"].astype(jnp.bfloat16),
        "b1": params["b1"].reshape(1, -1).astype(jnp.float32),
        "w2": params["w2"].astype(jnp.bfloat16),
        "b2": params["b2"].reshape(1, -1).astype(jnp.float32),
        "w3": params["w3"].astype(jnp.bfloat16),
        "b3": params["b3"].reshape(1, -1).astype(jnp.float32),
    }


def actor_forward(x, prep, *, batch_tile=1024):
    """x: (B, s_dim) float32. prep: output of prepare_actor_params."""
    w1, b1 = prep["w1"], prep["b1"]
    w2, b2 = prep["w2"], prep["b2"]
    w3, b3 = prep["w3"], prep["b3"]

    B, s_dim = x.shape
    hidden = w1.shape[1]
    a_dim = w3.shape[1]

    # --- balanced batch tiling ---
    n_tiles = max(_cdiv(B, batch_tile), 1)
    # Give the v7x megacore something to shard over when a single tile would
    # otherwise cover a large batch (harmless ~0.35 us extra on 1-TC parts).
    if n_tiles == 1 and B >= 256:
        n_tiles = 2
    tb = _round_up(_cdiv(B, n_tiles), 16)        # multiple of 16 sublanes
    b_pad = tb * n_tiles
    if b_pad != B:
        x = jnp.pad(x, ((0, b_pad - B), (0, 0)))

    # Resident operands (weights/biases): constant index_map -> stay in VMEM.
    resident = lambda a: pl.BlockSpec(a.shape, lambda i: tuple(0 for _ in a.shape))

    cost = pl.CostEstimate(
        flops=2 * b_pad * (s_dim * hidden + hidden * hidden + hidden * a_dim),
        transcendentals=b_pad * a_dim,
        bytes_accessed=(x.size * 4                                   # x (f32)
                        + (w1.size + w2.size + w3.size) * 2          # bf16 weights
                        + (b1.size + b2.size + b3.size) * 4          # f32 biases
                        + b_pad * a_dim * 4),                        # f32 output
    )

    out = pl.pallas_call(
        actor_kernel,
        out_shape=jax.ShapeDtypeStruct((b_pad, a_dim), jnp.float32),
        grid_spec=pltpu.PrefetchScalarGridSpec(
            num_scalar_prefetch=0,
            grid=(n_tiles,),
            in_specs=[
                pl.BlockSpec((tb, s_dim), lambda i: (i, 0)),   # x tile (f32)
                resident(w1), resident(b1),
                resident(w2), resident(b2),
                resident(w3), resident(b3),
            ],
            # a_dim equals the full output minor dim -> valid block; masked
            # stores of a few lanes are far cheaper than 32x padded writeback.
            out_specs=pl.BlockSpec((tb, a_dim), lambda i: (i, 0)),
        ),
        compiler_params=pltpu.CompilerParams(
            dimension_semantics=("parallel",),
        ),
        cost_estimate=cost,
    )(x, w1, b1, w2, b2, w3, b3)

    return out[:B] if b_pad != B else out


def init_actor_params(key, s_dim, a_dim, hidden_dim=256):
    """Deterministic init mimicking nn.Linear's U(-1/sqrt(fan_in), 1/sqrt(fan_in)).

    Weights are stored (in_features, out_features), i.e. transposed vs. PyTorch,
    so the kernel computes plain `x @ W` on the MXU.
    """
    ks = jax.random.split(key, 6)

    def linear(kw, kb, fan_in, fan_out):
        bound = 1.0 / jnp.sqrt(fan_in)
        w = jax.random.uniform(kw, (fan_in, fan_out), jnp.float32, -bound, bound)
        b = jax.random.uniform(kb, (fan_out,), jnp.float32, -bound, bound)
        return w, b

    w1, b1 = linear(ks[0], ks[1], s_dim, hidden_dim)
    w2, b2 = linear(ks[2], ks[3], hidden_dim, hidden_dim)
    w3, b3 = linear(ks[4], ks[5], hidden_dim, a_dim)
    return {"w1": w1, "b1": b1, "w2": w2, "b2": b2, "w3": w3, "b3": b3}


if __name__ == "__main__":
    key = jax.random.PRNGKey(0)
    k_x, k_p = jax.random.split(key)

    # Small shapes consistent with the module's forward: (batch, s_dim) -> (batch, a_dim)
    batch, s_dim, a_dim, hidden = 8, 16, 4, 32

    x = jax.random.normal(k_x, (batch, s_dim), dtype=jnp.float32)
    params = init_actor_params(k_p, s_dim, a_dim, hidden_dim=hidden)
    prep = prepare_actor_params(params)   # one-time, off the hot path

    y = actor_forward(x, prep)
    y = jax.block_until_ready(y)

    # Pure-JAX f32 reference of the fused MLP (kernel uses bf16 matmul operands,
    # so compare with a bf16-appropriate tolerance).
    h1 = jnp.maximum(x @ params["w1"] + params["b1"], 0.0)
    h2 = jnp.maximum(h1 @ params["w2"] + params["b2"], 0.0)
    y_ref = jnp.tanh(h2 @ params["w3"] + params["b3"])
    assert y.shape == (batch, a_dim)
    assert jnp.allclose(y, y_ref, atol=2e-2, rtol=2e-2), (
        f"max abs err {jnp.max(jnp.abs(y - y_ref))}")

    print("KERNEL_OK")
</pallas_src>

<mosaic_0001>
module attributes {stable_mosaic.version = 11 : i64} {
  func.func @actor_kernel(%arg0: i32, %arg1: memref<16x16xf32, #tpu.memory_space<vmem>>, %arg2: memref<16x32xbf16, #tpu.memory_space<vmem>>, %arg3: memref<1x32xf32, #tpu.memory_space<vmem>>, %arg4: memref<32x32xbf16, #tpu.memory_space<vmem>>, %arg5: memref<1x32xf32, #tpu.memory_space<vmem>>, %arg6: memref<32x4xbf16, #tpu.memory_space<vmem>>, %arg7: memref<1x4xf32, #tpu.memory_space<vmem>>, %arg8: memref<16x4xf32, #tpu.memory_space<vmem>>) attributes {dimension_semantics = [#tpu.dimension_semantics<parallel>], iteration_bounds = array<i64: 1>, scalar_prefetch = 0 : i64, scratch_operands = 0 : i64, tpu.core_type = #tpu.core_type<tc>, window_params = [{transform_indices = @transform_0, window_bounds = array<i64: 16, 16>}, {pipeline_mode = #tpu.pipeline_mode<synchronous>, transform_indices = @transform_1, window_bounds = array<i64: 16, 32>}, {pipeline_mode = #tpu.pipeline_mode<synchronous>, transform_indices = @transform_2, window_bounds = array<i64: 1, 32>}, {pipeline_mode = #tpu.pipeline_mode<synchronous>, transform_indices = @transform_3, window_bounds = array<i64: 32, 32>}, {pipeline_mode = #tpu.pipeline_mode<synchronous>, transform_indices = @transform_4, window_bounds = array<i64: 1, 32>}, {pipeline_mode = #tpu.pipeline_mode<synchronous>, transform_indices = @transform_5, window_bounds = array<i64: 32, 4>}, {pipeline_mode = #tpu.pipeline_mode<synchronous>, transform_indices = @transform_6, window_bounds = array<i64: 1, 4>}, {transform_indices = @transform_7, window_bounds = array<i64: 16, 4>}]} {
    %c0 = arith.constant 0 : index
    %c0_0 = arith.constant 0 : index
    %0 = vector.load %arg1[%c0, %c0_0] : memref<16x16xf32, #tpu.memory_space<vmem>>, vector<16x16xf32>
    %1 = arith.truncf %0 : vector<16x16xf32> to vector<16x16xbf16>
    %c0_1 = arith.constant 0 : index
    %c0_2 = arith.constant 0 : index
    %2 = vector.load %arg2[%c0_1, %c0_2] : memref<16x32xbf16, #tpu.memory_space<vmem>>, vector<16x32xbf16>
    %cst = arith.constant dense<0.000000e+00> : vector<16x32xf32>
    %3 = tpu.matmul %1, %2, %cst {dimension_numbers = #tpu.dot_dimension_numbers<[1], [0], [0], [1], [0, 0, 1, 1], [], []>} : vector<16x16xbf16>, vector<16x32xbf16>, vector<16x32xf32> -> vector<16x32xf32>
    %c0_3 = arith.constant 0 : index
    %c0_4 = arith.constant 0 : index
    %4 = vector.load %arg3[%c0_3, %c0_4] : memref<1x32xf32, #tpu.memory_space<vmem>>, vector<1x32xf32>
    %5 = vector.broadcast %4 : vector<1x32xf32> to vector<16x32xf32>
    %6 = arith.addf %3, %5 : vector<16x32xf32>
    %cst_5 = arith.constant 0.000000e+00 : f32
    %7 = vector.broadcast %cst_5 : f32 to vector<16x32xf32>
    %8 = arith.maximumf %6, %7 : vector<16x32xf32>
    %9 = arith.truncf %8 : vector<16x32xf32> to vector<16x32xbf16>
    %c0_6 = arith.constant 0 : index
    %c0_7 = arith.constant 0 : index
    %10 = vector.load %arg4[%c0_6, %c0_7] : memref<32x32xbf16, #tpu.memory_space<vmem>>, vector<32x32xbf16>
    %cst_8 = arith.constant dense<0.000000e+00> : vector<16x32xf32>
    %11 = tpu.matmul %9, %10, %cst_8 {dimension_numbers = #tpu.dot_dimension_numbers<[1], [0], [0], [1], [0, 0, 1, 1], [], []>} : vector<16x32xbf16>, vector<32x32xbf16>, vector<16x32xf32> -> vector<16x32xf32>
    %c0_9 = arith.constant 0 : index
    %c0_10 = arith.constant 0 : index
    %12 = vector.load %arg5[%c0_9, %c0_10] : memref<1x32xf32, #tpu.memory_space<vmem>>, vector<1x32xf32>
    %13 = vector.broadcast %12 : vector<1x32xf32> to vector<16x32xf32>
    %14 = arith.addf %11, %13 : vector<16x32xf32>
    %cst_11 = arith.constant 0.000000e+00 : f32
    %15 = vector.broadcast %cst_11 : f32 to vector<16x32xf32>
    %16 = arith.maximumf %14, %15 : vector<16x32xf32>
    %17 = arith.truncf %16 : vector<16x32xf32> to vector<16x32xbf16>
    %c0_12 = arith.constant 0 : index
    %c0_13 = arith.constant 0 : index
    %18 = vector.load %arg6[%c0_12, %c0_13] : memref<32x4xbf16, #tpu.memory_space<vmem>>, vector<32x4xbf16>
    %cst_14 = arith.constant dense<0.000000e+00> : vector<16x4xf32>
    %19 = tpu.matmul %17, %18, %cst_14 {dimension_numbers = #tpu.dot_dimension_numbers<[1], [0], [0], [1], [0, 0, 1, 1], [], []>} : vector<16x32xbf16>, vector<32x4xbf16>, vector<16x4xf32> -> vector<16x4xf32>
    %c0_15 = arith.constant 0 : index
    %c0_16 = arith.constant 0 : index
    %20 = vector.load %arg7[%c0_15, %c0_16] : memref<1x4xf32, #tpu.memory_space<vmem>>, vector<1x4xf32>
    %21 = vector.broadcast %20 : vector<1x4xf32> to vector<16x4xf32>
    %22 = arith.addf %19, %21 : vector<16x4xf32>
    %23 = math.tanh %22 : vector<16x4xf32>
    %c0_17 = arith.constant 0 : index
    %c0_18 = arith.constant 0 : index
    %24 = vector.load %arg8[%c0_17, %c0_18] : memref<16x4xf32, #tpu.memory_space<vmem>>, vector<16x4xf32>
    tpu.vector_store %arg8[%c0_17, %c0_18], %23 {strides = array<i32>} : memref<16x4xf32, #tpu.memory_space<vmem>>, vector<16x4xf32>,
    return
  }
  func.func @transform_0(%arg0: i32) -> (i32, i32) {
    %c0_i32 = arith.constant 0 : i32
    %c0_i32_0 = arith.constant 0 : i32
    return %arg0, %c0_i32 : i32, i32
  }
  func.func @transform_1(%arg0: i32) -> (i32, i32) {
    %c0_i32 = arith.constant 0 : i32
    %c0_i32_0 = arith.constant 0 : i32
    %c0_i32_1 = arith.constant 0 : i32
    return %c0_i32, %c0_i32_0 : i32, i32
  }
  func.func @transform_2(%arg0: i32) -> (i32, i32) {
    %c0_i32 = arith.constant 0 : i32
    %c0_i32_0 = arith.constant 0 : i32
    %c0_i32_1 = arith.constant 0 : i32
    return %c0_i32, %c0_i32_0 : i32, i32
  }
  func.func @transform_3(%arg0: i32) -> (i32, i32) {
    %c0_i32 = arith.constant 0 : i32
    %c0_i32_0 = arith.constant 0 : i32
    %c0_i32_1 = arith.constant 0 : i32
    return %c0_i32, %c0_i32_0 : i32, i32
  }
  func.func @transform_4(%arg0: i32) -> (i32, i32) {
    %c0_i32 = arith.constant 0 : i32
    %c0_i32_0 = arith.constant 0 : i32
    %c0_i32_1 = arith.constant 0 : i32
    return %c0_i32, %c0_i32_0 : i32, i32
  }
  func.func @transform_5(%arg0: i32) -> (i32, i32) {
    %c0_i32 = arith.constant 0 : i32
    %c0_i32_0 = arith.constant 0 : i32
    %c0_i32_1 = arith.constant 0 : i32
    return %c0_i32, %c0_i32_0 : i32, i32
  }
  func.func @transform_6(%arg0: i32) -> (i32, i32) {
    %c0_i32 = arith.constant 0 : i32
    %c0_i32_0 = arith.constant 0 : i32
    %c0_i32_1 = arith.constant 0 : i32
    return %c0_i32, %c0_i32_0 : i32, i32
  }
  func.func @transform_7(%arg0: i32) -> (i32, i32) {
    %c0_i32 = arith.constant 0 : i32
    %c0_i32_0 = arith.constant 0 : i32
    return %arg0, %c0_i32 : i32, i32
  }
}

</mosaic_0001>

<bundles_post_ra>
// kernel: tpu_custom_call.1
= control target key start
LH: loop header
LB: loop body
LE: loop exit
PB: predicated region body
PF: predicated region fallthrough
CT: control target
= control target key end

     0   :  { %12 = vsyncpa [#allocation3], 0  ;;  %s352_s0 = inlined_call_operand.vmem [shape: f32[16,16], index: 0, kind: input, shape index: {}]   ;;  %s353_s1 = inlined_call_operand.hbm [shape: bf16[16,32], index: 1, kind: input, shape index: {}]   ;;  %s354_s2 = inlined_call_operand.vmem [shape: f32[1,32], index: 2, kind: input, shape index: {}]   ;;  %s355_s3 = inlined_call_operand.hbm [shape: bf16[32,32], index: 3, kind: input, shape index: {}]   ;;  %s356_s4 = inlined_call_operand.vmem [shape: f32[1,32], index: 4, kind: input, shape index: {}]   ;;  %s357_s5 = inlined_call_operand.vmem [shape: bf16[32,4], index: 5, kind: input, shape index: {}]   ;;  %s358_s6 = inlined_call_operand.vmem [shape: f32[1,4], index: 6, kind: input, shape index: {}]   ;;  %s359_s7 = inlined_call_operand.vmem [shape: f32[16,4], index: 7, kind: output, shape index: {}]  }
   0x1   :  { %s20_s26 = sshll.u32 %s353_s1, 4  ;;  %s21_s26 = int_to_ptr.hbm [resolvable:$true] %s20_s26 }
   0x2   :  { %13 = vsyncpa [#allocation5], 0  ;;  %s275_s27 = smov [#allocation2]   ;;  %s35_s8 = sshll.u32 %s355_s3, 4  ;;  %s36_s8 = int_to_ptr.hbm [resolvable:$true] %s35_s8 }
   0x3   :  { %s22_s28 = sshll.u32 %s275_s27, 4  ;;  %s276_s9 = smov 64   ;;  %s23_s28 = int_to_ptr.vmem [resolvable:$true] %s22_s28 }
   0x4   :  { %s277_s10 = smov 4   ;;  %s278_s11 = smov [#allocation4]  }
   0x5   :  { %28 = dma.hbm_to_vmem [thread:$0]  %s21_s26, 128, %s23_s28, [#allocation3], %s276_s9, %s276_s9, %s277_s10  }
   0x6   :  { %s37_s12 = sshll.u32 %s278_s11, 4  ;;  %s38_s12 = int_to_ptr.vmem [resolvable:$true] %s37_s12 }
   0x7   :  { %43 = dma.hbm_to_vmem [thread:$0]  %s36_s8, 256, %s38_s12, [#allocation5], %s276_s9, %s276_s9, %s277_s10  }
   0x8   :  { %271 = dma.done.wait [#allocation3], 128  }
   0x9   :  { %272 = vsyncadd [#allocation3], 4294967168 }
   0xa   :  { %273 = dma.done.wait [#allocation5], 256  }
   0xb   :  { %274 = vsyncadd [#allocation5], 4294967040  ;;  %v207_v0 = vld [vmem:[#allocation2] sm:$0xff]  ;;  %v60_v2 = vld [vmem:[%s352_s0 + $0x8] sm:$0xff]  ;;  %vm74_vm0 = vcmask 130048   ;;  %vm115_vm1 = vcmask 261120  }
   0xc   :  { %v59_v1 = vld [vmem:[%s352_s0] sm:$0xff]  ;;  %85 = vmatpush.bf16.msra.mxu0 %v207_v0  ;;  %v209_v4 = vld [vmem:[#allocation4 + $0x8] sm:$0xff]  ;;  %v208_v5 = vld [vmem:[#allocation4] sm:$0xff]  ;;  %vm175_vm2 = vcmask 31744  }
   0xd   :  { %v61_v3 = vpack.c.bf16 %v60_v2, %v59_v1  ;;  %125 = vmatpush.bf16.msra.mxu1 %v209_v4  ;;  %v216_v7 = vld [vmem:[%s354_s2] ss:$0 sm:$0xff]  ;;  %v211_v14 = vld [vmem:[%s357_s5 + $0x8] sm:$0xff] }
   0xe   :  { %165 = vmatpush.bf16.msra.mxu2 %v211_v14  ;;  %v210_v15 = vld [vmem:[%s357_s5] sm:$0xff] }
   0xf   :  { %188 = vmatmul.msk.bf16.vlgmr.msra.gmra.mxu0 %vm74_vm0, %v61_v3  ;;  %v217_v17 = vld [vmem:[%s356_s4] ss:$0 sm:$0xff] }
  0x10   :  { %v218_v24 = vld [vmem:[%s358_s6] ss:$0 sm:$0xff] }
  0x11   :  { %126 = vmatpush.bf16.msra.mxu1 %v208_v5 }
  0x12   :  { %166 = vmatpush.bf16.msra.mxu2 %v210_v15 }
  0x8c   :  { %v87_v6 = vpop.f32.mrf.mxu0 }
  0x8d   :  { %v88_v8 = vadd.f32 %v216_v7, %v87_v6 }
  0x8f   :  { %v92_v11 = vmax.f32 %v88_v8, 0.0 }
  0x94   :  { %v89_v9 = vpop.f32.mrf.mxu0 }
  0x95   :  { %v90_v10 = vadd.f32 %v216_v7, %v89_v9 }
  0x97   :  { %v93_v12 = vmax.f32 %v90_v10, 0.0 }
  0x99   :  { %v94_v13 = vpack.c.bf16 %v93_v12, %v92_v11 }
  0x9b   :  { %197 = vmatmul.msk.bf16.vlgmr.msra.gmra.mxu1 %vm115_vm1, %v94_v13 }
 0x118   :  { %v128_v16 = vpop.f32.mrf.mxu1 }
 0x119   :  { %v129_v18 = vadd.f32 %v217_v17, %v128_v16 }
 0x11b   :  { %v133_v21 = vmax.f32 %v129_v18, 0.0 }
 0x120   :  { %v130_v19 = vpop.f32.mrf.mxu1 }
 0x121   :  { %v131_v20 = vadd.f32 %v217_v17, %v130_v19 }
 0x123   :  { %v134_v22 = vmax.f32 %v131_v20, 0.0 }
 0x125   :  { %v135_v23 = vpack.c.bf16 %v134_v22, %v133_v21 }
 0x127   :  { %206 = vmatmul.msk.bf16.vlgmr.msra.gmra.mxu2 %vm115_vm1, %v135_v23 }
 0x1aa   :  { %v168_v25 = vpop.f32.mrf.mxu2 }
 0x1ab   :  { %v169_v26 = vadd.f32 %v218_v24, %v168_v25 }
 0x1ad   :  { %219 = vtanh.f32 %v169_v26 }
 0x1b2   :  { %v170_v27 = vpop.f32.mrf.mxu2 }
 0x1b3   :  { %v220_v28 = vpop.eup %219  ;;  %v171_v29 = vadd.f32 %v218_v24, %v170_v27 }
 0x1b4   :  { %176 = vst.msk [vmem:[%s359_s7] sm:$0xff] %vm175_vm2, %v220_v28 }
 0x1b5   :  { %221 = vtanh.f32 %v171_v29 }
 0x1bb   :  { %v222_v30 = vpop.eup %221 }
 0x1bc   :  { %177 = vst.msk [vmem:[%s359_s7 + $0x8] sm:$0xff] %vm175_vm2, %v222_v30 }
 0x1bd   :  { %182 = vsyncpa [#allocation3], 1 }
 0x1be   :  { %183 = vsyncpa [#allocation5], 1 }

</bundles_post_ra>
